<compile_context>
chip_gen: v7x
topology: tpu7x:2x2x1
jax: 0.10.0
libtpu: 0.0.40
codegen_flags: <defaults>
</compile_context>

<pallas_src>
import jax
import jax.numpy as jnp
from jax.experimental import pallas as pl
from jax.experimental.pallas import tpu as pltpu


# Below this size a plain XLA copy beats any custom-kernel launch.
_SMALL_COPY_BYTES = 1 << 20  # 1 MiB


# ---------------------------------------------------------------------------
# Fast path: the module's forward is literally "return (self.params, None)",
# so the optimal implementation is no kernel and no data movement at all.
# ---------------------------------------------------------------------------
def dummy_parameter_encoder_forward(x, params):
    """Mirror of DummyParameterEncoder.forward(x) -> (self.params, None).

    `x` is accepted for signature parity but, exactly like the PyTorch
    module, is never read.
    """
    del x  # unused, matching the reference semantics
    return params, None


# ---------------------------------------------------------------------------
# Copy path: a single HBM->HBM async DMA (no VMEM staging, no grid).
# ---------------------------------------------------------------------------
def _dma_copy_kernel(p_hbm_ref, o_hbm_ref, sem):
    # Pure memcpy: one DMA descriptor, start + wait.  No HBM->VMEM->vreg
    # round trip, no vld/vst bundle work, no tiling.
    cp = pltpu.make_async_copy(p_hbm_ref, o_hbm_ref, sem)
    cp.start()
    cp.wait()


def _pallas_hbm_copy(params):
    """Materialize a fresh copy of `params` with a single DMA."""
    itemsize = jnp.dtype(params.dtype).itemsize
    nbytes = int(params.size) * itemsize
    return pl.pallas_call(
        _dma_copy_kernel,
        out_shape=jax.ShapeDtypeStruct(params.shape, params.dtype),
        in_specs=[pl.BlockSpec(memory_space=pl.ANY)],
        out_specs=pl.BlockSpec(memory_space=pl.ANY),
        scratch_shapes=[pltpu.SemaphoreType.DMA(())],
        cost_estimate=pl.CostEstimate(
            flops=0, transcendentals=0, bytes_accessed=2 * nbytes
        ),
    )(params)


def dummy_parameter_encoder_forward_copy(x, params, force_kernel: bool = False):
    """Same semantics as forward(), but returns a freshly materialized copy
    of params.

    * Small params (< 1 MiB) short-circuit to a plain XLA copy unless
      `force_kernel=True` (launch overhead would dominate otherwise).
    * Larger params go through a single HBM->HBM Pallas DMA.
    """
    del x  # unused

    itemsize = jnp.dtype(params.dtype).itemsize
    nbytes = int(params.size) * itemsize
    if not force_kernel and nbytes < _SMALL_COPY_BYTES:
        # Let XLA emit the copy; strictly faster than any custom launch here.
        return jnp.copy(params), None

    return _pallas_hbm_copy(params), None


def init_params(key, param_shape, ones: bool = False, dtype=jnp.float32):
    """Stand-in for torch.rand(param_shape) / torch.ones(param_shape)."""
    if ones:
        return jnp.ones(param_shape, dtype=dtype)
    return jax.random.uniform(key, param_shape, dtype=dtype)


if __name__ == "__main__":
    key = jax.random.PRNGKey(0)
    k_param, k_x = jax.random.split(key)

    # Small shapes: param_shape (8, 128) — one (sublane, lane) aligned tile.
    param_shape = (8, 128)
    params = init_params(k_param, param_shape, ones=False)

    # Dummy input (ignored by the forward pass, like the PyTorch module).
    x = jax.random.normal(k_x, (2, 4, 16, 16), dtype=jnp.float32)

    # 1) Fast path (the recommended implementation): no kernel, no copy.
    out_fast, aux_fast = dummy_parameter_encoder_forward(x, params)
    out_fast = jax.block_until_ready(out_fast)
    assert aux_fast is None
    assert out_fast.shape == param_shape
    assert jnp.array_equal(out_fast, params)

    # 2) Copy path, small-size short-circuit (plain XLA copy).
    out_small, aux_small = dummy_parameter_encoder_forward_copy(x, params)
    out_small = jax.block_until_ready(out_small)
    assert aux_small is None
    assert jnp.array_equal(out_small, params)

    # 3) Copy path, Pallas HBM->HBM DMA kernel (forced so it actually runs).
    out_copy, aux_copy = dummy_parameter_encoder_forward_copy(
        x, params, force_kernel=True
    )
    out_copy = jax.block_until_ready(out_copy)
    assert aux_copy is None
    assert out_copy.shape == param_shape
    assert out_copy.dtype == params.dtype
    assert jnp.array_equal(out_copy, params), "kernel output must equal the parameters"

    print("KERNEL_OK")
</pallas_src>

<mosaic_0001>
module attributes {stable_mosaic.version = 11 : i64} {
  func.func @_dma_copy_kernel(%arg0: memref<8x128xf32, #tpu.memory_space<any>>, %arg1: memref<8x128xf32, #tpu.memory_space<any>>, %arg2: memref<!tpu.dma_semaphore, #tpu.memory_space<semaphore_mem>>) attributes {dimension_semantics = [], scalar_prefetch = 0 : i64, scratch_operands = 1 : i64, tpu.core_type = #tpu.core_type<tc>} {
    tpu.enqueue_dma source(%arg0 : memref<8x128xf32, #tpu.memory_space<any>>) target(%arg1 : memref<8x128xf32, #tpu.memory_space<any>>) target_semaphore(%arg2 : memref<!tpu.dma_semaphore, #tpu.memory_space<semaphore_mem>>)
    tpu.wait_dma2 semaphore(%arg2 : memref<!tpu.dma_semaphore, #tpu.memory_space<semaphore_mem>>) src(%arg0 : memref<8x128xf32, #tpu.memory_space<any>>) dst(%arg1 : memref<8x128xf32, #tpu.memory_space<any>>)
    return
  }
}

</mosaic_0001>

<bundles_post_ra>
// kernel: tpu_custom_call.1
= control target key start
LH: loop header
LB: loop body
LE: loop exit
PB: predicated region body
PF: predicated region fallthrough
CT: control target
= control target key end

     0   :  { %s34_s6 = smov [#allocation2]   ;;  %s35_s7 = smov [#allocation3]   ;;  %s53_s0 = inlined_call_operand.hbm [shape: f32[8,128], index: 0, kind: input, shape index: {}]   ;;  %s54_s1 = inlined_call_operand.hbm [shape: f32[8,128], index: 1, kind: output, shape index: {}]  }
   0x1   :  { %s36_s8 = smov 0  }
   0x2   :  { %18 = dma.general %s53_s0, 128, %s54_s1, %s34_s6, %s35_s7, [#allocation4], %s36_s8, 0  }
   0x3   :  { %32 = dma.done.wait [#allocation2], 128 }
   0x4   :  { %33 = vsyncadd [#allocation2], 4294967168 }
   0x5   :  { %22 = vsyncmov [#allocation2] }
   0x8   :  { %s23_s13 = vpop.sfrf %22 }
   0x9   :  { %p28_p0 = scmp.ne.s32.totalorder %s23_s13, 0 }
   0xb   :  { %27 = shalt.err (%p28_p0)  }

</bundles_post_ra>
